<compile_context>
chip_gen: v6e
topology: v6e:2x2x1
jax: 0.10.0
libtpu: 0.0.40
codegen_flags: <defaults>
</compile_context>

<pallas_src>
import math
import jax
import jax.numpy as jnp
from jax.experimental import pallas as pl
from jax.experimental.pallas import tpu as pltpu


_SQRT_2_OVER_PI = 0.7978845608028654  # sqrt(2 / pi)


def _gelu_tanh_f32(x):
    # Tanh-approximation GELU, exactly mirroring the PyTorch GELU module.
    x2 = x * x
    inner = _SQRT_2_OVER_PI * x * (1.0 + 0.044715 * x2)
    return 0.5 * x * (1.0 + jnp.tanh(inner))


def _feedforward_kernel(x_ref, w1_ref, b1_ref, w2_ref, b2_ref, o_ref):
    # Grid: (row tiles, hidden chunks); axis 1 is the reduction over H.
    # x_ref:  (tm, E) bf16     w1_ref: (E, th) bf16   b1_ref: (1, th) f32
    # w2_ref: (th, E) bf16     b2_ref: (1, E)  f32
    # o_ref:  (tm, E) f32 — resident across j (block index invariant), used as
    #                      the accumulator directly.
    j = pl.program_id(1)

    @pl.when(j == 0)
    def _():
        o_ref[...] = jnp.zeros_like(o_ref)

    # First matmul on the MXU in bf16, f32 accumulation.
    h = jnp.dot(x_ref[...], w1_ref[...], preferred_element_type=jnp.float32)
    h = h + b1_ref[...]                      # f32 bias add (broadcast over rows)
    g = _gelu_tanh_f32(h)                    # f32 elementwise, tanh on the EUP

    # Second matmul chunk, accumulated directly into the f32 output block.
    o_ref[...] += jnp.dot(g.astype(jnp.bfloat16), w2_ref[...],
                          preferred_element_type=jnp.float32)

    @pl.when(j == pl.num_programs(1) - 1)
    def _():
        o_ref[...] += b2_ref[...]


def _round_up(x, m):
    return ((x + m - 1) // m) * m


def _plan_tiles(M, E, H):
    """Pick (tm, th, grid_m, M_pad, vmem_limit) from the chip's VMEM budget."""
    try:
        vmem_phys = int(pltpu.get_tpu_info().vmem_capacity_bytes)
    except Exception:
        vmem_phys = 64 << 20                       # conservative fallback
    small_vmem = vmem_phys <= (64 << 20)           # v7x-class TensorCore

    # v7x ridge ~310 flops/byte -> tm~512 clears it inside 64 MiB;
    # v5e/v6e (128 MiB) take tm~1024 to clear v6e's ~650 flops/byte ridge.
    tm_target = 512 if small_vmem else 1024
    budget = (48 << 20) if small_vmem else (96 << 20)   # our tiles; Mosaic headroom left

    M8 = _round_up(max(M, 1), 8)
    grid_m = -(-M8 // tm_target)
    if small_vmem and grid_m == 1 and M8 >= 16:
        grid_m = 2                                 # keep both v7x TensorCores busy
    tm = _round_up(-(-M8 // grid_m), 8)

    def vmem_bytes(tm_, th_):
        x_t = 2 * tm_ * E * 2                      # bf16 x tile, double buffered
        o_t = 2 * tm_ * E * 4                      # f32 output accumulator, double buffered
        w_t = 2 * 2 * E * th_ * 2                  # bf16 W1/W2 chunks, double buffered
        b_t = 2 * (th_ + E) * 4                    # biases
        inter = tm_ * th_ * 6                      # f32 GELU intermediate + bf16 copy
        return x_t + o_t + w_t + b_t + inter

    def pick_th(tm_):
        # Prefer fully resident weights (DMA'd once); otherwise MXU-friendly chunks.
        for cand in (H, 512, 256, 128):
            ok = (cand == H) or (cand % 128 == 0 and H % cand == 0)
            if ok and vmem_bytes(tm_, cand) <= budget:
                return cand
        return None

    th = pick_th(tm)
    while th is None and tm > 8:                   # last resort: shrink the row tile
        tm = _round_up(max(8, tm // 2), 8)
        grid_m = -(-M8 // tm)
        th = pick_th(tm)
    if th is None:
        th = 128 if H % 128 == 0 else H

    M_pad = grid_m * tm
    vmem_limit = int(min(vmem_phys - (4 << 20),
                         max(vmem_bytes(tm, th) + (12 << 20), 32 << 20)))
    return tm, th, grid_m, M_pad, vmem_limit


def feedforward(x, w1, b1, w2, b2):
    """GPT MLP: GELU_tanh(x @ W1 + b1) @ W2 + b2.

    x: [B, T, E].  w1: [E, H], b1: [H], w2: [H, E], b2: [E].
    Returns [B, T, E] in x.dtype.
    """
    B, T, E = x.shape
    H = w1.shape[1]
    M = B * T

    tm, th, grid_m, M_pad, vmem_limit = _plan_tiles(M, E, H)
    grid_h = H // th

    # bf16 activations & weights into the MXU; f32 biases & accumulation.
    x2 = x.reshape(M, E).astype(jnp.bfloat16)
    if M_pad != M:
        x2 = jnp.pad(x2, ((0, M_pad - M), (0, 0)))
    w1_bf = w1.astype(jnp.bfloat16)
    w2_bf = w2.astype(jnp.bfloat16)
    b1_2d = b1.reshape(1, H).astype(jnp.float32)
    b2_2d = b2.reshape(1, E).astype(jnp.float32)

    weight_passes = 1 if th == H else grid_m       # resident weights stream once
    cost = pl.CostEstimate(
        flops=4 * M_pad * E * H,                   # two GEMMs
        transcendentals=M_pad * H,                 # one tanh per hidden element
        bytes_accessed=(M_pad * E * 2              # x read (bf16)
                        + M_pad * E * 4            # out write (f32)
                        + weight_passes * 2 * E * H * 2   # bf16 weights
                        + weight_passes * (H + E) * 4),   # biases
    )

    out2 = pl.pallas_call(
        _feedforward_kernel,
        out_shape=jax.ShapeDtypeStruct((M_pad, E), jnp.float32),
        grid_spec=pltpu.PrefetchScalarGridSpec(
            num_scalar_prefetch=0,
            grid=(grid_m, grid_h),
            in_specs=[
                pl.BlockSpec((tm, E), lambda i, j: (i, 0)),   # x row tile (resident over j)
                pl.BlockSpec((E, th), lambda i, j: (0, j)),   # W1 hidden chunk
                pl.BlockSpec((1, th), lambda i, j: (0, j)),   # b1 hidden chunk
                pl.BlockSpec((th, E), lambda i, j: (j, 0)),   # W2 hidden chunk
                pl.BlockSpec((1, E), lambda i, j: (0, 0)),    # b2 (resident)
            ],
            out_specs=pl.BlockSpec((tm, E), lambda i, j: (i, 0)),  # f32 accumulator
        ),
        compiler_params=pltpu.CompilerParams(
            dimension_semantics=("parallel", "arbitrary"),
            vmem_limit_bytes=vmem_limit,
        ),
        cost_estimate=cost,
    )(x2, w1_bf, b1_2d, w2_bf, b2_2d)

    if M_pad != M:
        out2 = out2[:M]
    return out2.reshape(B, T, E).astype(x.dtype)


if __name__ == "__main__":
    # Small shapes consistent with the module's forward (emb_dim scaled down).
    B, T, E = 2, 8, 128
    H = 4 * E  # 512

    key = jax.random.PRNGKey(0)
    kx, kw1, kb1, kw2, kb2 = jax.random.split(key, 5)

    x = jax.random.normal(kx, (B, T, E), dtype=jnp.float32)
    # Deterministic parameter init (analogous scale to nn.Linear's default).
    w1 = jax.random.uniform(kw1, (E, H), jnp.float32, -1.0, 1.0) / math.sqrt(E)
    b1 = jax.random.uniform(kb1, (H,), jnp.float32, -1.0, 1.0) / math.sqrt(E)
    w2 = jax.random.uniform(kw2, (H, E), jnp.float32, -1.0, 1.0) / math.sqrt(H)
    b2 = jax.random.uniform(kb2, (E,), jnp.float32, -1.0, 1.0) / math.sqrt(H)

    out = feedforward(x, w1, b1, w2, b2)
    out = jax.block_until_ready(out)

    # Pure-f32 reference; kernel uses bf16 MXU inputs with f32 accumulation,
    # so allow small numerical drift.
    ref = _gelu_tanh_f32(x.reshape(-1, E) @ w1 + b1) @ w2 + b2
    ref = ref.reshape(B, T, E)
    assert out.shape == (B, T, E)
    assert jnp.allclose(out, ref, atol=3e-2, rtol=3e-2), "mismatch vs reference"

    print("KERNEL_OK")
</pallas_src>

<mosaic_0001>
module attributes {stable_mosaic.version = 11 : i64} {
  func.func @_feedforward_kernel(%arg0: i32, %arg1: i32, %arg2: memref<8x128xbf16, #tpu.memory_space<vmem>>, %arg3: memref<128x512xbf16, #tpu.memory_space<vmem>>, %arg4: memref<1x512xf32, #tpu.memory_space<vmem>>, %arg5: memref<512x128xbf16, #tpu.memory_space<vmem>>, %arg6: memref<1x128xf32, #tpu.memory_space<vmem>>, %arg7: memref<8x128xf32, #tpu.memory_space<vmem>>) attributes {dimension_semantics = [#tpu.dimension_semantics<parallel>, #tpu.dimension_semantics<arbitrary>], iteration_bounds = array<i64: 2, 1>, scalar_prefetch = 0 : i64, scratch_operands = 0 : i64, tpu.core_type = #tpu.core_type<tc>, window_params = [{transform_indices = @transform_0, window_bounds = array<i64: 8, 128>}, {transform_indices = @transform_1, window_bounds = array<i64: 128, 512>}, {transform_indices = @transform_2, window_bounds = array<i64: 1, 512>}, {transform_indices = @transform_3, window_bounds = array<i64: 512, 128>}, {pipeline_mode = #tpu.pipeline_mode<synchronous>, transform_indices = @transform_4, window_bounds = array<i64: 1, 128>}, {transform_indices = @transform_5, window_bounds = array<i64: 8, 128>}]} {
    %c0_i32 = arith.constant 0 : i32
    %0 = arith.cmpi eq, %arg1, %c0_i32 : i32
    %1 = arith.extui %0 : i1 to i32
    %c0_i32_0 = arith.constant 0 : i32
    %2 = arith.cmpi ne, %1, %c0_i32_0 : i32
    scf.if %2 {
      %cst_20 = arith.constant 0.000000e+00 : f32
      %32 = vector.broadcast %cst_20 : f32 to vector<8x128xf32>
      %c0_21 = arith.constant 0 : index
      %c0_22 = arith.constant 0 : index
      %33 = vector.load %arg7[%c0_21, %c0_22] : memref<8x128xf32, #tpu.memory_space<vmem>>, vector<8x128xf32>
      tpu.vector_store %arg7[%c0_21, %c0_22], %32 {strides = array<i32>} : memref<8x128xf32, #tpu.memory_space<vmem>>, vector<8x128xf32>,
    } else {
    }
    %c0 = arith.constant 0 : index
    %c0_1 = arith.constant 0 : index
    %3 = vector.load %arg2[%c0, %c0_1] : memref<8x128xbf16, #tpu.memory_space<vmem>>, vector<8x128xbf16>
    %c0_2 = arith.constant 0 : index
    %c0_3 = arith.constant 0 : index
    %4 = vector.load %arg3[%c0_2, %c0_3] : memref<128x512xbf16, #tpu.memory_space<vmem>>, vector<128x512xbf16>
    %cst = arith.constant dense<0.000000e+00> : vector<8x512xf32>
    %5 = tpu.matmul %3, %4, %cst {dimension_numbers = #tpu.dot_dimension_numbers<[1], [0], [0], [1], [0, 0, 1, 1], [], []>} : vector<8x128xbf16>, vector<128x512xbf16>, vector<8x512xf32> -> vector<8x512xf32>
    %c0_4 = arith.constant 0 : index
    %c0_5 = arith.constant 0 : index
    %6 = vector.load %arg4[%c0_4, %c0_5] : memref<1x512xf32, #tpu.memory_space<vmem>>, vector<1x512xf32>
    %7 = vector.broadcast %6 : vector<1x512xf32> to vector<8x512xf32>
    %8 = arith.addf %5, %7 : vector<8x512xf32>
    %9 = arith.mulf %8, %8 : vector<8x512xf32>
    %cst_6 = arith.constant 0.797884583 : f32
    %10 = vector.broadcast %cst_6 : f32 to vector<8x512xf32>
    %11 = arith.mulf %10, %8 : vector<8x512xf32>
    %cst_7 = arith.constant 4.471500e-02 : f32
    %12 = vector.broadcast %cst_7 : f32 to vector<8x512xf32>
    %13 = arith.mulf %12, %9 : vector<8x512xf32>
    %cst_8 = arith.constant 1.000000e+00 : f32
    %14 = vector.broadcast %cst_8 : f32 to vector<8x512xf32>
    %15 = arith.addf %14, %13 : vector<8x512xf32>
    %16 = arith.mulf %11, %15 : vector<8x512xf32>
    %cst_9 = arith.constant 5.000000e-01 : f32
    %17 = vector.broadcast %cst_9 : f32 to vector<8x512xf32>
    %18 = arith.mulf %17, %8 : vector<8x512xf32>
    %19 = math.tanh %16 : vector<8x512xf32>
    %cst_10 = arith.constant 1.000000e+00 : f32
    %20 = vector.broadcast %cst_10 : f32 to vector<8x512xf32>
    %21 = arith.addf %20, %19 : vector<8x512xf32>
    %22 = arith.mulf %18, %21 : vector<8x512xf32>
    %c0_11 = arith.constant 0 : index
    %c0_12 = arith.constant 0 : index
    %23 = vector.load %arg7[%c0_11, %c0_12] : memref<8x128xf32, #tpu.memory_space<vmem>>, vector<8x128xf32>
    %24 = arith.truncf %22 : vector<8x512xf32> to vector<8x512xbf16>
    %c0_13 = arith.constant 0 : index
    %c0_14 = arith.constant 0 : index
    %25 = vector.load %arg5[%c0_13, %c0_14] : memref<512x128xbf16, #tpu.memory_space<vmem>>, vector<512x128xbf16>
    %cst_15 = arith.constant dense<0.000000e+00> : vector<8x128xf32>
    %26 = tpu.matmul %24, %25, %cst_15 {dimension_numbers = #tpu.dot_dimension_numbers<[1], [0], [0], [1], [0, 0, 1, 1], [], []>} : vector<8x512xbf16>, vector<512x128xbf16>, vector<8x128xf32> -> vector<8x128xf32>
    %27 = arith.addf %23, %26 : vector<8x128xf32>
    %c0_16 = arith.constant 0 : index
    %c0_17 = arith.constant 0 : index
    %28 = vector.load %arg7[%c0_16, %c0_17] : memref<8x128xf32, #tpu.memory_space<vmem>>, vector<8x128xf32>
    tpu.vector_store %arg7[%c0_16, %c0_17], %27 {strides = array<i32>} : memref<8x128xf32, #tpu.memory_space<vmem>>, vector<8x128xf32>,
    %c0_i32_18 = arith.constant 0 : i32
    %29 = arith.cmpi eq, %arg1, %c0_i32_18 : i32
    %30 = arith.extui %29 : i1 to i32
    %c0_i32_19 = arith.constant 0 : i32
    %31 = arith.cmpi ne, %30, %c0_i32_19 : i32
    scf.if %31 {
      %c0_20 = arith.constant 0 : index
      %c0_21 = arith.constant 0 : index
      %32 = vector.load %arg7[%c0_20, %c0_21] : memref<8x128xf32, #tpu.memory_space<vmem>>, vector<8x128xf32>
      %c0_22 = arith.constant 0 : index
      %c0_23 = arith.constant 0 : index
      %33 = vector.load %arg6[%c0_22, %c0_23] : memref<1x128xf32, #tpu.memory_space<vmem>>, vector<1x128xf32>
      %34 = vector.broadcast %33 : vector<1x128xf32> to vector<8x128xf32>
      %35 = arith.addf %32, %34 : vector<8x128xf32>
      %c0_24 = arith.constant 0 : index
      %c0_25 = arith.constant 0 : index
      %36 = vector.load %arg7[%c0_24, %c0_25] : memref<8x128xf32, #tpu.memory_space<vmem>>, vector<8x128xf32>
      tpu.vector_store %arg7[%c0_24, %c0_25], %35 {strides = array<i32>} : memref<8x128xf32, #tpu.memory_space<vmem>>, vector<8x128xf32>,
    } else {
    }
    return
  }
  func.func @transform_0(%arg0: i32, %arg1: i32) -> (i32, i32) {
    %c0_i32 = arith.constant 0 : i32
    %c0_i32_0 = arith.constant 0 : i32
    return %arg0, %c0_i32 : i32, i32
  }
  func.func @transform_1(%arg0: i32, %arg1: i32) -> (i32, i32) {
    %c0_i32 = arith.constant 0 : i32
    %c0_i32_0 = arith.constant 0 : i32
    return %c0_i32, %arg1 : i32, i32
  }
  func.func @transform_2(%arg0: i32, %arg1: i32) -> (i32, i32) {
    %c0_i32 = arith.constant 0 : i32
    %c0_i32_0 = arith.constant 0 : i32
    return %c0_i32, %arg1 : i32, i32
  }
  func.func @transform_3(%arg0: i32, %arg1: i32) -> (i32, i32) {
    %c0_i32 = arith.constant 0 : i32
    %c0_i32_0 = arith.constant 0 : i32
    return %arg1, %c0_i32 : i32, i32
  }
  func.func @transform_4(%arg0: i32, %arg1: i32) -> (i32, i32) {
    %c0_i32 = arith.constant 0 : i32
    %c0_i32_0 = arith.constant 0 : i32
    %c0_i32_1 = arith.constant 0 : i32
    return %c0_i32, %c0_i32_0 : i32, i32
  }
  func.func @transform_5(%arg0: i32, %arg1: i32) -> (i32, i32) {
    %c0_i32 = arith.constant 0 : i32
    %c0_i32_0 = arith.constant 0 : i32
    return %arg0, %c0_i32 : i32, i32
  }
}

</mosaic_0001>

<bundles_post_ra>
// kernel: tpu_custom_call.1
= control target key start
LH: loop header
LB: loop body
LE: loop exit
PB: predicated region body
PF: predicated region fallthrough
CT: control target
= control target key end

     0   :  { %s1887_s0 = inlined_call_operand.hbm [shape: bf16[16,128], index: 0, kind: input, shape index: {}]   ;;  %s1888_s1 = inlined_call_operand.hbm [shape: bf16[128,512], index: 1, kind: input, shape index: {}]   ;;  %s1889_s2 = inlined_call_operand.hbm [shape: f32[1,512], index: 2, kind: input, shape index: {}]   ;;  %s1890_s3 = inlined_call_operand.hbm [shape: bf16[512,128], index: 3, kind: input, shape index: {}]   ;;  %s1891_s4 = inlined_call_operand.vmem [shape: f32[1,128], index: 4, kind: input, shape index: {}]   ;;  %s1892_s5 = inlined_call_operand.hbm [shape: f32[16,128], index: 5, kind: output, shape index: {}]  }
   0x1   :  { %1897 = sst [smem:[#allocation15_spill]] %s1888_s1 }
   0x2   :  { %10 = vsyncpa [#allocation3], 0 }
   0x3   :  { %12 = vsyncpa [#allocation3 + $0x1], 0 }
   0x4   :  { %13 = vsyncpa [#allocation6], 0 }
   0x5   :  { %14 = vsyncpa [#allocation9], 0 }
   0x6   :  { %15 = vsyncpa [#allocation4], 0 }
   0x7   :  { %17 = vsyncpa [#allocation4 + $0x1], 0  ;;  %s1694_s18 = smov 0   ;;  %s1696_s19 = smov 0  }
   0x8   :  { %s1698_s20 = smov 0   ;;  %s1700_s21 = smov 0  }
   0x9   :  { %s1702_s22 = smov 0   ;;  %s1704_s23 = smov 0  }
   0xa LB: > { %s1143_s24 = sadd.s32 4294967295, %s1652_s23   ;;  %s1144_s25 = sadd.s32 4294967294, %s1652_s23   ;;  %s1652_s23 = sphi %s1704_s23, %s23_s23   ;;  %s1648_s22 = sphi %s1702_s22, %s1916_s22   ;;  %s1644_s21 = sphi %s1700_s21, %s1915_s21   ;;  %s1640_s20 = sphi %s1698_s20, %s1914_s20   ;;  %s1636_s19 = sphi %s1696_s19, %s1913_s19   ;;  %s1632_s18 = sphi %s1694_s18, %s1912_s18  }
   0xb   : > { %p55_p0 = scmp.ne.s32.totalorder %s1636_s19, %s1632_s18  ;;  %p1728_p1 = scmp.eq.s32.totalorder %s1143_s24, 0 }
   0xc   : > { %p1732_p2 = scmp.eq.s32.totalorder %s1143_s24, 1  ;;  %p184_p3 = scmp.eq.s32.totalorder %s1144_s25, 1 }
   0xd   : > { %s1898_s26 = scalar_select %p1728_p1, 1, 0 }
   0xe   : > { %p1738_p4 = por %p1728_p1, %p55_p0  ;;  %p1145_p5 = scmp.ge.s32.totalorder %s1652_s23, 1 }
   0xf   : > { %p1743_p6 = por %p184_p3, %p55_p0  ;;  %p191_p7 = scmp.lt.s32.totalorder %s1652_s23, 3 }
  0x10   : > { %s1900_s28 = scalar_select %p1738_p4, 1, 0 }
  0x11   : > { %s1901_s29 = scalar_select %p1743_p6, 1, 0 }
  0x12   : > { %p1748_p8 = pnand %p1145_p5, %p191_p7  ;;  %s1654_s6 = smov [#allocation5]  }
  0x13   : > { %s206_s7 = sshll.u32 %s1654_s6, 4  ;;  %s1655_s9 = smov [#allocation7]   ;;  %s207_s7 = int_to_ptr.vmem [resolvable:$true] %s206_s7 }
  0x14   : > { %s1902_s30 = scalar_select %p1748_p8, 1, 0 }
  0x15   : > { %p1287_p9 = pneg %p1748_p8  ;;  %s223_s10 = sshll.u32 %s1655_s9, 4  ;;  %s224_s10 = int_to_ptr.vmem [resolvable:$true] %s223_s10 }
  0x16   : > { %s1656_s11 = smov [#allocation8]   ;;  %s1469_s13 = scalar_lea.vmem %s207_s7, 4096 }
  0x17   : > { %p1757_p11 = pnand %p1287_p9, %p1728_p1  ;;  %s236_s12 = sshll.u32 %s1656_s11, 4  ;;  %s237_s12 = int_to_ptr.vmem [resolvable:$true] %s236_s12 }
  0x18   : > { %p1470_p13 = scmp.ne.s32.totalorder %s207_s7, %s1469_s13  ;;  %p1477_p5 = scmp.lt.s32.totalorder %s207_s7, %s207_s7 }
  0x19   : > { %p1460_p12 = pneg %p1757_p11  ;;  %p1478_p7 = scmp.lt.s32.totalorder %s1469_s13, %s1469_s13 }
  0x1b   : > { %p1472_p0 = pnand %p1470_p13, %p1460_p12  ;;  %p1479_p9 = por %p1478_p7, %p1477_p5 }
  0x1d   : > { %p1473_p3 = pneg %p1472_p0 }
  0x1f   : > { %p1480_p10 = pnand %p1479_p9, %p1473_p3 }
  0x21   : > { %1483 = shalt.err (!%p1480_p10)
}
  0x22   : > { %s1657_s14 = smov 256   ;;  %s1658_s15 = smov 16  }
  0x23   : > { %s1904_s1 = sld [smem:[#allocation15_spill]]  ;;  %s1495_s24 = scalar_lea.vmem %s224_s10, 64 }
  0x24   : > { %p1496_p6 = scmp.ne.s32.totalorder %s224_s10, %s1495_s24  ;;  %p1503_p1 = scmp.lt.s32.totalorder %s224_s10, %s224_s10 }
  0x25   : > { %p1504_p4 = scmp.lt.s32.totalorder %s1495_s24, %s1495_s24 }
  0x26   : > { %p1498_p13 = pnand %p1496_p6, %p1460_p12 }
  0x27   : > { %p1505_p5 = por %p1504_p4, %p1503_p1 }
  0x28   : > { %p1499_p0 = pneg %p1498_p13 }
  0x29   : > { %1290 = dma.hbm_to_vmem [thread:$0]  (!%p1757_p11), %s1904_s1, 4096, %s207_s7, [#allocation6], %s1657_s14, %s1657_s14, %s1658_s15  }
  0x2a   : > { %p1506_p3 = pnand %p1505_p5, %p1499_p0 }
  0x2c   : > { %1509 = shalt.err (!%p1506_p3)
}
  0x2d   : > { %1293 = dma.hbm_to_vmem [thread:$0]  (!%p1757_p11), %s1889_s2, 64, %s224_s10, [#allocation6]  }
  0x2e   : > { %s1521_s7 = scalar_lea.vmem %s237_s12, 4096  ;;  %p1529_p9 = scmp.lt.s32.totalorder %s237_s12, %s237_s12 }
  0x2f   : > { %p1522_p10 = scmp.ne.s32.totalorder %s237_s12, %s1521_s7  ;;  %p1530_p13 = scmp.lt.s32.totalorder %s1521_s7, %s1521_s7 }
  0x31   : > { %p1524_p7 = pnand %p1522_p10, %p1460_p12  ;;  %p1531_p8 = por %p1530_p13, %p1529_p9 }
  0x33   : > { %p1525_p6 = pneg %p1524_p7 }
  0x35   : > { %p1532_p1 = pnand %p1531_p8, %p1525_p6 }
  0x37   : > { %1535 = shalt.err (!%p1532_p1)
}
  0x38   : > { %s1659_s9 = smov 64   ;;  %s1660_s10 = smov 4  }
  0x39   : > { %1296 = dma.hbm_to_vmem [thread:$0]  (!%p1757_p11), %s1890_s3, 4096, %s237_s12, [#allocation9], %s1659_s9, %s1659_s9, %s1660_s10  }
  0x3a   : > { %s42_s14 = sadd.s32 1, %s1640_s20  ;;  %s35_s15 = sadd.s32 1, %s1648_s22 }
  0x3b   : > { %p49_p4 = scmp.ne.s32.totalorder %s1640_s20, %s1636_s19  ;;  %p37_p8 = scmp.ge.s32.totalorder %s35_s15, 2 }
  0x3c   : > { %p50_p12 = scmp.eq.s32.totalorder %s1652_s23, 0  ;;  %p1308_p5 = scmp.lt.s32.totalorder %s1652_s23, 2 }
  0x3d   : > { %p1794_p0 = por %p1732_p2, %p49_p4  ;;  %s1918_s15 = smov (%p37_p8, %s35_s15), 0 }
  0x3e   : > { %p51_p3 = por %p50_p12, %p49_p4  ;;  %s253_s8 = sand.u32 1, %s1640_s20  }
  0x3f   : > { %s39_s17 = ssub.s32 %s1648_s22, %s1918_s15  ;;  %s1150_s12 = sshll.u32 %s253_s8, 2 }
  0x40   : > { %p40_p10 = scmp.eq.s32.totalorder %s39_s17, 0  ;;  %s1151_s24 = sshll.u32 %s1648_s22, 6 }
  0x41   : > { %s262_s27 = scalar_lea.hbm %s1887_s0, %s1151_s24  ;;  %s257_s9 = scalar_lea.vmem [#allocation2], %s1150_s12 }
  0x42   : > { %s1806_s25 = scalar_select %p40_p10, %s1640_s20, %s42_s14  }
  0x43   : > { %s264_s10 = sshll.u32 %s257_s9, 4  ;;  %p1813_p2 = pnand %p1308_p5, %p51_p3  ;;  %s265_s10 = int_to_ptr.vmem [resolvable:$true] %s264_s10 }
  0x44   : > { %s254_s13 = scalar_lea.sflag [#allocation3], %s253_s8  ;;  %s1549_s17 = scalar_lea.vmem %s265_s10, 64 }
  0x45   : > { %p1538_p11 = pneg %p1813_p2  ;;  %p1550_p7 = scmp.ne.s32.totalorder %s265_s10, %s1549_s17 }
  0x46   : > { %s1661_s14 = smov [#allocation2]  }
  0x47   : > { %p1552_p6 = pnand %p1550_p7, %p1538_p11  ;;  %s1554_s1 = sshll.u32 %s1661_s14, 4  ;;  %s1555_s1 = int_to_ptr.vmem [resolvable:$false] %s1554_s1 }
  0x48   : > { %s1556_s24 = scalar_lea.vmem %s1555_s1, 128  ;;  %p1557_p13 = scmp.lt.s32.totalorder %s265_s10, %s1555_s1 }
  0x49   : > { %p1553_p9 = pneg %p1552_p6  ;;  %p1558_p1 = scmp.lt.s32.totalorder %s1556_s24, %s1549_s17 }
  0x4b   : > { %p1559_p4 = por %p1558_p1, %p1557_p13 }
  0x4d   : > { %p1560_p8 = pnand %p1559_p4, %p1553_p9 }
  0x4f   : > { %1563 = shalt.err (!%p1560_p8)
}
  0x50   : > { %1300 = dma.hbm_to_vmem [thread:$0]  (!%p1813_p2), %s262_s27, 64, %s265_s10, %s254_s13  }
  0x51   : > { %p1907_p12 = scmp.ne.s32.totalorder %s1902_s30, 0 }
  0x52   : > { %s1824_s8 = sand.u32 (!%p1907_p12), 1, %s1636_s19   ;;  %p1908_p5 = scmp.ne.s32.totalorder (!%p1907_p12), %s1900_s28, 0 }
  0x53   : > { %273 = sbr.rel (%p1907_p12) target bundleno = 569 (0x239), region = 40  ;;  %s1153_s12 = sshll.u32 (!%p1907_p12), %s1824_s8, 2 }
  0x54   : > { %s276_s6 = scalar_lea.sflag (!%p1907_p12), [#allocation3], %s1824_s8  ;;  %s1828_s7 = scalar_lea.vmem (!%p1907_p12), [#allocation2], %s1153_s12 }
  0x58   : > { %1615 = dma.done.wait (%p1908_p5), %s276_s6, 64  }
  0x59   : > { %1617 = vsyncadd (%p1908_p5), %s276_s6, 4294967232  ;;  %p1909_p3 = scmp.ne.s32.totalorder %s1898_s26, 0 }
  0x5b   : > { %1619 = dma.done.wait (%p1909_p3), [#allocation6], 4160  }
  0x5c   : > { %1621 = vsyncadd (%p1909_p3), [#allocation6], 4294963136 }
  0x5d   : > { %1623 = dma.done.wait (%p1909_p3), [#allocation9], 4096  }
  0x5e   : > { %1625 = vsyncadd (%p1909_p3), [#allocation9], 4294963200  ;;  %v1662_v0 = vmov 0   ;;  %v1370_v1 = vld [vmem:[#allocation5 + $0xe4] ss:$16 sps:$4 sm:$0xff]   ;;  %v1418_v34 = vld [vmem:[#allocation8 + $0x78] sm:$0xff]  }
  0x5f   : > { %574 = vmatprep.mubr.bf16.mxu0 %v1662_v0  ;;  %615 = vmatprep.mubr.bf16.mxu1 %v1662_v0  ;;  %v1372_v2 = vld [vmem:[#allocation5 + $0xec] ss:$16 sps:$4 sm:$0xff]   ;;  %v1374_v3 = vld [vmem:[#allocation5 + $0xe0] ss:$16 sps:$4 sm:$0xff]   ;;  %v1375_v4 = vld [vmem:[#allocation5 + $0xe8] ss:$16 sps:$4 sm:$0xff]  }
  0x60   : > { %542 = vmatprep.subr.bf16.mxu0 %v1370_v1  ;;  %583 = vmatprep.subr.bf16.mxu1 %v1372_v2  ;;  %v1376_v5 = vld [vmem:[#allocation5 + $0xc4] ss:$16 sps:$4 sm:$0xff]   ;;  %v1378_v6 = vld [vmem:[#allocation5 + $0xcc] ss:$16 sps:$4 sm:$0xff]   ;;  %v1380_v7 = vld [vmem:[#allocation5 + $0xc0] ss:$16 sps:$4 sm:$0xff]   ;;  %v362_v2 = vlaneseq }
  0x61   : > { %543 = vmatpush1.bf16.msra.mxu0 %v1374_v3  ;;  %584 = vmatpush1.bf16.msra.mxu1 %v1375_v4  ;;  %v1381_v8 = vld [vmem:[#allocation5 + $0xc8] ss:$16 sps:$4 sm:$0xff]   ;;  %v1382_v9 = vld [vmem:[#allocation5 + $0xa4] ss:$16 sps:$4 sm:$0xff]   ;;  %v1384_v10 = vld [vmem:[#allocation5 + $0xac] ss:$16 sps:$4 sm:$0xff]  }
  0x62   : > { %544 = vmatprep.subr.bf16.mxu0 %v1376_v5  ;;  %585 = vmatprep.subr.bf16.mxu1 %v1378_v6  ;;  %v1386_v11 = vld [vmem:[#allocation5 + $0xa0] ss:$16 sps:$4 sm:$0xff]   ;;  %v1387_v12 = vld [vmem:[#allocation5 + $0xa8] ss:$16 sps:$4 sm:$0xff]   ;;  %v1388_v13 = vld [vmem:[#allocation5 + $0x84] ss:$16 sps:$4 sm:$0xff]  }
  0x63   : > { %v1390_v14 = vld [vmem:[#allocation5 + $0x8c] ss:$16 sps:$4 sm:$0xff]   ;;  %v1392_v15 = vld [vmem:[#allocation5 + $0x80] ss:$16 sps:$4 sm:$0xff]   ;;  %v1393_v16 = vld [vmem:[#allocation5 + $0x88] ss:$16 sps:$4 sm:$0xff]  }
  0x64   : > { %v1394_v17 = vld [vmem:[#allocation5 + $0x64] ss:$16 sps:$4 sm:$0xff]   ;;  %v1396_v18 = vld [vmem:[#allocation5 + $0x6c] ss:$16 sps:$4 sm:$0xff]   ;;  %v1398_v19 = vld [vmem:[#allocation5 + $0x60] ss:$16 sps:$4 sm:$0xff]  }
  0x65   : > { %545 = vmatpush1.bf16.msra.mxu0 %v1380_v7  ;;  %586 = vmatpush1.bf16.msra.mxu1 %v1381_v8  ;;  %v1399_v20 = vld [vmem:[#allocation5 + $0x68] ss:$16 sps:$4 sm:$0xff]   ;;  %v1400_v21 = vld [vmem:[#allocation5 + $0x44] ss:$16 sps:$4 sm:$0xff]   ;;  %v1402_v22 = vld [vmem:[#allocation5 + $0x4c] ss:$16 sps:$4 sm:$0xff]  }
  0x66   : > { %546 = vmatprep.subr.bf16.mxu0 %v1382_v9  ;;  %587 = vmatprep.subr.bf16.mxu1 %v1384_v10  ;;  %v1404_v23 = vld [vmem:[#allocation5 + $0x40] ss:$16 sps:$4 sm:$0xff]   ;;  %v1405_v24 = vld [vmem:[#allocation5 + $0x48] ss:$16 sps:$4 sm:$0xff]   ;;  %v1406_v25 = vld [vmem:[#allocation5 + $0x24] ss:$16 sps:$4 sm:$0xff]  }
  0x67   : > { %v1408_v26 = vld [vmem:[#allocation5 + $0x2c] ss:$16 sps:$4 sm:$0xff]   ;;  %v1410_v27 = vld [vmem:[#allocation5 + $0x20] ss:$16 sps:$4 sm:$0xff]   ;;  %v1411_v28 = vld [vmem:[#allocation5 + $0x28] ss:$16 sps:$4 sm:$0xff]  }
  0x68   : > { %v1412_v29 = vld [vmem:[#allocation5 + $0x4] ss:$16 sps:$4 sm:$0xff]   ;;  %v1414_v30 = vld [vmem:[#allocation5 + $0xc] ss:$16 sps:$4 sm:$0xff]   ;;  %v1416_v31 = vld [vmem:[#allocation5] ss:$16 sps:$4 sm:$0xff]  }
  0x69   : > { %547 = vmatpush1.bf16.msra.mxu0 %v1386_v11  ;;  %588 = vmatpush1.bf16.msra.mxu1 %v1387_v12  ;;  %v1417_v32 = vld [vmem:[#allocation5 + $0x8] ss:$16 sps:$4 sm:$0xff]   ;;  %v1419_v35 = vld [vmem:[#allocation8 + $0xf8] sm:$0xff]   ;;  %v1426_v42 = vld [vmem:[#allocation8 + $0x68] sm:$0xff]   ;;  %v363_v3 = vshrl.u32 %v362_v2, 7  ;;  %s1157_s1 = sshll.u32 %s1824_s8, 3 }
  0x6a   : > { %548 = vmatprep.subr.bf16.mxu0 %v1388_v13  ;;  %589 = vmatprep.subr.bf16.mxu1 %v1390_v14  ;;  %v327_v33 = vld [vmem:[%s1828_s7] sm:$0xf]  ;;  %v1427_v43 = vld [vmem:[#allocation8 + $0xe8] sm:$0xff]   ;;  %v1430_v46 = vld [vmem:[#allocation8 + $0x60] sm:$0xff]   ;;  %s1224_s30 = sshll.u32 %s1644_s21, 7  ;;  %s317_s27 = scalar_lea.vmem [#allocation10], %s1157_s1 }
  0x6b   : > { %v1420_v36 = vld [vmem:[#allocation8 + $0x38] sm:$0xff]   ;;  %v1422_v38 = vld [vmem:[#allocation8 + $0x70] sm:$0xff]   ;;  %v1428_v44 = vld [vmem:[#allocation8 + $0x28] sm:$0xff]   ;;  %v364_v4 = vsub.s32 0, %v363_v3  ;;  %v372_v5 = vsub.s32 2, %v363_v3  ;;  %v368_v7 = vsub.s32 1, %v363_v3  ;;  %s1028_s13 = scalar_lea.hbm %s1892_s5, %s1224_s30 }
  0x6c   : > { %v1421_v37 = vld [vmem:[#allocation8 + $0xb8] sm:$0xff]   ;;  %v1423_v39 = vld [vmem:[#allocation8 + $0xf0] sm:$0xff]   ;;  %v1429_v45 = vld [vmem:[#allocation8 + $0xa8] sm:$0xff]   ;;  %v376_v8 = vsub.s32 3, %v363_v3  ;;  %s1030_s9 = sshll.u32 %s317_s27, 4  ;;  %s1017_s17 = scalar_lea.sflag [#allocation4], %s1824_s8  ;;  %s1031_s9 = int_to_ptr.vmem [resolvable:$true] %s1030_s9 }
  0x6d   : > { %549 = vmatpush1.bf16.msra.mxu0 %v1392_v15  ;;  %590 = vmatpush1.bf16.msra.mxu1 %v1393_v16  ;;  %v1424_v40 = vld [vmem:[#allocation8 + $0x30] sm:$0xff]   ;;  %v1431_v47 = vld [vmem:[#allocation8 + $0xe0] sm:$0xff]   ;;  %v1434_v50 = vld [vmem:[#allocation8 + $0x58] sm:$0xff]   ;;  %s1564_s14 = scalar_lea.vmem %s1031_s9, 128  ;;  %s1663_s24 = smov [#allocation10]  }
  0x6e   : > { %550 = vmatprep.subr.bf16.mxu0 %v1394_v17  ;;  %591 = vmatprep.subr.bf16.mxu1 %v1396_v18  ;;  %v1425_v41 = vld [vmem:[#allocation8 + $0xb0] sm:$0xff]   ;;  %v1432_v48 = vld [vmem:[#allocation8 + $0x20] sm:$0xff]   ;;  %v1435_v51 = vld [vmem:[#allocation8 + $0xd8] sm:$0xff]   ;;  %p1565_p10 = scmp.ne.s32.totalorder %s1031_s9, %s1564_s14  ;;  %s1568_s12 = sshll.u32 %s1663_s24, 4  ;;  %s1569_s12 = int_to_ptr.vmem [resolvable:$false] %s1568_s12 }
  0x6f   : > { %v1433_v49 = vld [vmem:[#allocation8 + $0xa0] sm:$0xff]   ;;  %v1436_v52 = vld [vmem:[#allocation8 + $0x18] sm:$0xff]   ;;  %v1438_v54 = vld [vmem:[#allocation8 + $0x50] sm:$0xff]   ;;  %s1570_s6 = scalar_lea.vmem %s1569_s12, 256  ;;  %p1571_p7 = scmp.lt.s32.totalorder %s1031_s9, %s1569_s12 }
  0x70   : > { %v1437_v53 = vld [vmem:[#allocation8 + $0x98] sm:$0xff]   ;;  %v1439_v55 = vld [vmem:[#allocation8 + $0xd0] sm:$0xff]   ;;  %v1442_v58 = vld [vmem:[#allocation8 + $0x48] sm:$0xff]   ;;  %p1566_p2 = pnand %p1565_p10, %p1794_p0  ;;  %p1572_p6 = scmp.lt.s32.totalorder %s1570_s6, %s1564_s14 }
  0x71   : > { %551 = vmatpush1.bf16.msra.mxu0 %v1398_v19  ;;  %592 = vmatpush1.bf16.msra.mxu1 %v1399_v20  ;;  %v1440_v56 = vld [vmem:[#allocation8 + $0x10] sm:$0xff]   ;;  %v1443_v59 = vld [vmem:[#allocation8 + $0xc8] sm:$0xff]   ;;  %v1446_v62 = vld [vmem:[#allocation8 + $0x40] sm:$0xff]  }
  0x72   : > { %552 = vmatprep.subr.bf16.mxu0 %v1400_v21  ;;  %593 = vmatprep.subr.bf16.mxu1 %v1402_v22  ;;  %v1441_v57 = vld [vmem:[#allocation8 + $0x90] sm:$0xff]   ;;  %v1444_v60 = vld [vmem:[#allocation8 + $0x8] sm:$0xff]   ;;  %v1447_v63 = vld [vmem:[#allocation8 + $0xc0] sm:$0xff]   ;;  %p1567_p11 = pneg %p1566_p2  ;;  %p1573_p9 = por %p1572_p6, %p1571_p7 }
  0x73   : > { %v1445_v61 = vld [vmem:[#allocation8 + $0x88] sm:$0xff]   ;;  %v1448_v0 = vld [vmem:[#allocation8] sm:$0xff]   ;;  %v360_v6 = vld [vmem:[#allocation7] sm:$0xf] }
  0x74   : > { %v1449_v1 = vld [vmem:[#allocation8 + $0x80] sm:$0xff]   ;;  %v365_v9 = vrot.slane %v360_v6, %v364_v4  ;;  %v373_v10 = vrot.slane %v360_v6, %v372_v5  ;;  %v369_v13 = vrot.slane %v360_v6, %v368_v7  ;;  %v377_v14 = vrot.slane %v360_v6, %v376_v8  ;;  %p1574_p13 = pnand %p1573_p9, %p1567_p11 }
  0x75   : > { %553 = vmatpush1.bf16.msra.mxu0 %v1404_v23  ;;  %594 = vmatpush1.bf16.msra.mxu1 %v1405_v24 }
  0x76   : > { %554 = vmatprep.subr.bf16.mxu0 %v1406_v25  ;;  %595 = vmatprep.subr.bf16.mxu1 %v1408_v26 }
  0x79   : > { %555 = vmatpush1.bf16.msra.mxu0 %v1410_v27  ;;  %596 = vmatpush1.bf16.msra.mxu1 %v1411_v28 }
  0x7a   : > { %556 = vmatprep.subr.bf16.mxu0 %v1412_v29  ;;  %597 = vmatprep.subr.bf16.mxu1 %v1414_v30 }
  0x7d   : > { %557 = vmatpush1.bf16.msra.mxu0 %v1416_v31  ;;  %598 = vmatpush1.bf16.msra.mxu1 %v1417_v32 }
  0x7e   : > { %1227 = vmatprep.subr.bf16.mxu0 %v1418_v34  ;;  %1249 = vmatprep.subr.bf16.mxu1 %v1419_v35 }
  0x80   : > { %575 = vmatmul.mubr.bf16.vlgmr.msra.gmra.mxu0 %v327_v33  ;;  %616 = vmatmul.mubr.bf16.vlgmr.msra.gmra.mxu1 %v327_v33 }
  0x81   : > { %1228 = vmatpush3.bf16.msra.mxu0 %v1420_v36  ;;  %1250 = vmatpush3.bf16.msra.mxu1 %v1421_v37 }
  0x82   : > { %1229 = vmatprep.subr.bf16.mxu0 %v1422_v38  ;;  %1251 = vmatprep.subr.bf16.mxu1 %v1423_v39 }
  0x85   : > { %1230 = vmatpush3.bf16.msra.mxu0 %v1424_v40  ;;  %1252 = vmatpush3.bf16.msra.mxu1 %v1425_v41 }
  0x86   : > { %1231 = vmatprep.subr.bf16.mxu0 %v1426_v42  ;;  %1253 = vmatprep.subr.bf16.mxu1 %v1427_v43 }
  0x89   : > { %1232 = vmatpush3.bf16.msra.mxu0 %v1428_v44  ;;  %1254 = vmatpush3.bf16.msra.mxu1 %v1429_v45 }
  0x8a   : > { %1233 = vmatprep.subr.bf16.mxu0 %v1430_v46  ;;  %1255 = vmatprep.subr.bf16.mxu1 %v1431_v47 }
  0x8d   : > { %1234 = vmatpush3.bf16.msra.mxu0 %v1432_v48  ;;  %1256 = vmatpush3.bf16.msra.mxu1 %v1433_v49 }
  0x8e   : > { %1235 = vmatprep.subr.bf16.mxu0 %v1434_v50  ;;  %1257 = vmatprep.subr.bf16.mxu1 %v1435_v51 }
  0x91   : > { %1236 = vmatpush3.bf16.msra.mxu0 %v1436_v52  ;;  %1258 = vmatpush3.bf16.msra.mxu1 %v1437_v53 }
  0x92   : > { %1237 = vmatprep.subr.bf16.mxu0 %v1438_v54  ;;  %1259 = vmatprep.subr.bf16.mxu1 %v1439_v55 }
  0x95   : > { %1238 = vmatpush3.bf16.msra.mxu0 %v1440_v56  ;;  %1260 = vmatpush3.bf16.msra.mxu1 %v1441_v57 }
  0x96   : > { %1239 = vmatprep.subr.bf16.mxu0 %v1442_v58  ;;  %1261 = vmatprep.subr.bf16.mxu1 %v1443_v59 }
  0x99   : > { %1240 = vmatpush3.bf16.msra.mxu0 %v1444_v60  ;;  %1262 = vmatpush3.bf16.msra.mxu1 %v1445_v61 }
  0x9a   : > { %1241 = vmatprep.subr.bf16.mxu0 %v1446_v62  ;;  %1263 = vmatprep.subr.bf16.mxu1 %v1447_v63 }
  0x9d   : > { %1242 = vmatpush3.bf16.msra.mxu0 %v1448_v0  ;;  %1264 = vmatpush3.bf16.msra.mxu1 %v1449_v1 }
 0x140   : > { %v576_v11 = vpop.f32.mrf.mxu0  ;;  %v617_v12 = vpop.f32.mrf.mxu1 }
 0x141   : > { %v577_v15 = vadd.f32 %v576_v11, %v365_v9  ;;  %v618_v16 = vadd.f32 %v617_v12, %v373_v10  ;;  %v1222_v12 = vld [vmem:[%s1891_s4] ss:$0 sm:$0xff] }
 0x142   : > { %v578_v17 = vpop.f32.mrf.mxu0  ;;  %v619_v18 = vpop.f32.mrf.mxu1 }
 0x143   : > { %v624_v19 = vmul.f32 %v577_v15, %v577_v15  ;;  %v626_v20 = vmul.f32 %v618_v16, %v618_v16  ;;  %v579_v21 = vadd.f32 %v578_v17, %v369_v13  ;;  %v620_v22 = vadd.f32 %v619_v18, %v377_v14 }
 0x144   : > { %v580_v23 = vpop.f32.mrf.mxu0  ;;  %v621_v24 = vpop.f32.mrf.mxu1  ;;  %v628_v31 = vmul.f32 0.7978846, %v577_v15  ;;  %v630_v33 = vmul.f32 0.7978846, %v618_v16  ;;  %v644_v50 = vmul.f32 0.5, %v577_v15  ;;  %v646_v52 = vmul.f32 0.5, %v618_v16 }
 0x145   : > { %v632_v25 = vmul.f32 0.044715, %v624_v19  ;;  %v634_v26 = vmul.f32 0.044715, %v626_v20  ;;  %v625_v27 = vmul.f32 %v579_v21, %v579_v21  ;;  %v627_v28 = vmul.f32 %v620_v22, %v620_v22 }
 0x146   : > { %v581_v29 = vpop.f32.mrf.mxu0  ;;  %v622_v30 = vpop.f32.mrf.mxu1  ;;  %v629_v39 = vmul.f32 0.7978846, %v579_v21  ;;  %v631_v41 = vmul.f32 0.7978846, %v620_v22  ;;  %v645_v53 = vmul.f32 0.5, %v579_v21  ;;  %v647_v56 = vmul.f32 0.5, %v620_v22 }
 0x147   : > { %v636_v32 = vadd.f32 1.0, %v632_v25  ;;  %v638_v34 = vadd.f32 1.0, %v634_v26  ;;  %v633_v35 = vmul.f32 0.044715, %v625_v27  ;;  %v635_v36 = vmul.f32 0.044715, %v627_v28 }
 0x149   : > { %v640_v37 = vmul.f32 %v636_v32, %v628_v31  ;;  %v642_v38 = vmul.f32 %v638_v34, %v630_v33  ;;  %v637_v40 = vadd.f32 1.0, %v633_v35  ;;  %v639_v42 = vadd.f32 1.0, %v635_v36 }
 0x14b   : > { %1450 = vtanh.f32 %v640_v37  ;;  %v641_v43 = vmul.f32 %v637_v40, %v629_v39  ;;  %v643_v44 = vmul.f32 %v639_v42, %v631_v41 }
 0x14c   : > { %1452 = vtanh.f32 %v642_v38 }
 0x14d   : > { %1454 = vtanh.f32 %v641_v43 }
 0x14e   : > { %1456 = vtanh.f32 %v643_v44 }
 0x158   : > { %v1451_v45 = vpop.eup %1450 }
 0x159   : > { %v1453_v46 = vpop.eup %1452  ;;  %v652_v47 = vadd.f32 1.0, %v1451_v45 }
 0x15a   : > { %v654_v48 = vadd.f32 1.0, %v1453_v46  ;;  %v1455_v49 = vpop.eup %1454 }
 0x15b   : > { %v1457_v51 = vpop.eup %1456  ;;  %v653_v54 = vadd.f32 1.0, %v1455_v49  ;;  %v656_v55 = vmul.f32 %v652_v47, %v644_v50 }
 0x15c   : > { %v655_v57 = vadd.f32 1.0, %v1457_v51  ;;  %v658_v58 = vmul.f32 %v654_v48, %v646_v52 }
 0x15d   : > { %v657_v59 = vmul.f32 %v653_v54, %v645_v53  ;;  %v661_v63 = vpack.c.bf16 %v656_v55, %v656_v55 }
 0x15e   : > { %v659_v60 = vmul.f32 %v655_v57, %v647_v56  ;;  %v663_v0 = vpack.c.bf16 %v658_v58, %v658_v58 }
 0x15f   : > { %v662_v61 = vpack.c.bf16 %v657_v59, %v657_v59 }
 0x160   : > { %v664_v62 = vpack.c.bf16 %v659_v60, %v659_v60 }
 0x161   : > { %953 = vmatprep.mubr.bf16.mxu0 %v662_v61 }
 0x162   : > { %993 = vmatprep.mubr.bf16.mxu1 %v664_v62  ;;  %954 = vmatmul.mubr.bf16.vlgmr.msra.gmra.mxu0 %v661_v63 }
 0x163   : > { %994 = vmatmul.mubr.bf16.vlgmr.msra.gmra.mxu1 %v663_v0 }
 0x222   : > { %v1243_v1 = vpop.f32.mrf.mxu0 }
 0x223   : > { %v1265_v2 = vpop.f32.mrf.mxu1 }
 0x224   : > { %v1244_v3 = vpop.f32.mrf.mxu0 }
 0x225   : > { %v1245_v4 = vadd.f32 %v1244_v3, %v1243_v1  ;;  %v1266_v5 = vpop.f32.mrf.mxu1 }
 0x226   : > { %v1267_v6 = vadd.f32 %v1266_v5, %v1265_v2  ;;  %v1246_v7 = vpop.f32.mrf.mxu0 }
 0x227   : > { %v1268_v8 = vpop.f32.mrf.mxu1 }
 0x228   : > { %v996_v9 = vadd.f32 %v1267_v6, %v1245_v4  ;;  %v1247_v10 = vpop.f32.mrf.mxu0 }
 0x229   : > { %v1269_v11 = vpop.f32.mrf.mxu1 }
 0x22a   : > { %v1014_v13 = vadd.f32 %v1222_v12, %v996_v9 }
 0x22c   : > { %1015 = vst [vmem:[%s317_s27] sm:$0xff] %v1014_v13 }
 0x22d   : > { %1577 = shalt.err (!%p1574_p13)
}
 0x22e   : > { %s1578_s21 = scalar_lea.hbm %s1028_s13, 128  ;;  %s1582_s1 = scalar_lea.hbm %s1892_s5, 256 }
 0x22f   : > { %p1579_p1 = scmp.ne.s32.totalorder %s1028_s13, %s1578_s21  ;;  %p1583_p12 = scmp.lt.s32.totalorder %s1028_s13, %s1892_s5 }
 0x230   : > { %p1584_p5 = scmp.lt.s32.totalorder %s1582_s1, %s1578_s21 }
 0x231   : > { %p1580_p4 = pnand %p1579_p1, %p1794_p0 }
 0x232   : > { %p1585_p3 = por %p1584_p5, %p1583_p12 }
 0x233   : > { %p1581_p8 = pneg %p1580_p4 }
 0x235   : > { %p1586_p10 = pnand %p1585_p3, %p1581_p8 }
 0x237   : > { %1589 = shalt.err (!%p1586_p10)
}
 0x238   : > { %1285 = dma.vmem_to_hbm [thread:$0]  (%p1794_p0), %s1031_s9, 128, %s1028_s13, %s1017_s17  }
 0x239 PF: > { %s1042_s30 = sand.u32 1, %s1632_s18   ;;  %p1910_p2 = scmp.ne.s32.totalorder %s1901_s29, 0 }
 0x23a   : > { %p1911_p11 = scmp.ge.s32.totalorder %s1652_s23, 2  ;;  %s1043_s27 = scalar_lea.sflag [#allocation4], %s1042_s30 }
 0x23c   : > { %p1302_p7 = pnand %p1911_p11, %p1910_p2 }
 0x23e   : > { %p1303_p6 = pneg %p1302_p7 }
 0x240   : > { %1627 = dma.done.wait (%p1303_p6), %s1043_s27, 128  }
 0x241   : > { %1629 = vsyncadd (%p1303_p6), %s1043_s27, 4294967168  ;;  %s23_s23 = sadd.s32 1, %s1652_s23   ;;  %s1912_s18 = smov %s1636_s19 }
 0x242   : > { %p20_p9 = scmp.ge.s32.totalorder %s23_s23, 4   ;;  %s1913_s19 = smov %s1640_s20 }
 0x243   : > { %s1914_s20 = smov %s1806_s25  ;;  %s1915_s21 = smov %s1648_s22 }
 0x244   : > { %s1916_s22 = smov %s1918_s15  ;;  %22 = sbr.rel (!%p20_p9) target bundleno = 10 (0xa), region = 108 }
 0x249   :  { %1048 = vsyncpa [#allocation3], 1 }
 0x24a   :  { %1050 = vsyncpa [#allocation3 + $0x1], 1 }
 0x24b   :  { %1051 = vsyncpa [#allocation6], 1 }
 0x24c   :  { %1052 = vsyncpa [#allocation9], 1 }
 0x24d   :  { %1053 = vsyncpa [#allocation4], 1 }
 0x24e   :  { %1055 = vsyncpa [#allocation4 + $0x1], 1 }

</bundles_post_ra>
